<compile_context>
chip_gen: v5e
topology: v5e:2x2
jax: 0.10.0
libtpu: 0.0.40
codegen_flags: <defaults>
</compile_context>

<pallas_src>
import functools

import numpy as np
import jax
import jax.numpy as jnp
from jax.experimental import pallas as pl
from jax.experimental.pallas import tpu as pltpu


# ----------------------------- numpy glue (transform math) -----------------------------

def bbox2point(left, right, top, bottom, type="mediapipe"):
    # DECA/EMOCA convention for the mediapipe detector (also used when no landmarks).
    if type in ("mediapipe", "kpt68"):
        old_size = (right - left + bottom - top) / 2.0 * 1.1
        center = np.array([right - (right - left) / 2.0,
                           bottom - (bottom - top) / 2.0], dtype=np.float64)
    else:  # 'bbox'
        old_size = (right - left + bottom - top) / 2.0
        center = np.array([right - (right - left) / 2.0,
                           bottom - (bottom - top) / 2.0 + old_size * 0.12],
                          dtype=np.float64)
    return old_size, center


def _interp_matrix(res, src_extent, a, offset):
    """Bilinear interpolation weight matrix (res, src_extent).

    Output coordinate r samples source coordinate src = r / a + offset.
    skimage mode='constant', cval=0: source samples outside [0, src_extent-1]
    contribute 0, but in-range neighbors of slightly-out-of-range coordinates
    still blend (edge rows get their partial weight).
    """
    W = np.zeros((res, src_extent), dtype=np.float32)
    for r in range(res):
        src = r / a + offset
        lo = int(np.floor(src))
        frac = src - lo
        hi = lo + 1
        if 0 <= lo <= src_extent - 1:
            W[r, lo] += (1.0 - frac)
        if 0 <= hi <= src_extent - 1:
            W[r, hi] += frac
    return W


# ----------------------------- cached warp-weight construction -----------------------------

_WEIGHT_CACHE = {}


def _get_warp_weights(H, W, res_input, scale, detector_type):
    """Returns (wct_dev (W, R) f32, wr_dev (R, H) f32 with 1/255 folded in, meta)."""
    key = (int(H), int(W), int(res_input), float(scale), str(detector_type))
    cached = _WEIGHT_CACHE.get(key)
    if cached is not None:
        return cached

    # no-landmarks path of warp_image
    left, top, right, bottom = 0, 0, W - 1, H - 1
    old_size, center = bbox2point(left, right, top, bottom, type=detector_type)
    size = int(old_size * scale)  # matches EMOCA: size = int(old_size * self.scale)

    # point2transform: similarity mapping the bbox corners onto the output square.
    # Pure scale+translation:  dst = a * (src - origin),  a = (res-1)/size
    a = (res_input - 1) / float(size)
    x0 = center[0] - size / 2.0
    y0 = center[1] - size / 2.0

    Wr = _interp_matrix(res_input, H, a, y0)  # (R, H)  rows: src_row = r/a + y0
    Wc = _interp_matrix(res_input, W, a, x0)  # (R, W)  cols: src_col = c/a + x0

    # 1/255 normalization folded into the row weights (image is uploaded as raw uint8).
    wr_dev = jnp.asarray((Wr * np.float32(1.0 / 255.0)).astype(np.float32))   # (R, H)
    wct_dev = jnp.asarray(np.ascontiguousarray(Wc.T.astype(np.float32)))      # (W, R)

    meta = {"size": size, "center": center, "Wr": Wr, "Wc": Wc}
    _WEIGHT_CACHE[key] = (wct_dev, wr_dev, meta)
    return wct_dev, wr_dev, meta


# ----------------------------- Pallas kernel -----------------------------

def _warp_kernel(img_ref, wct_ref, wr_ref, out_ref, tmp_ref, *, tm, h):
    # img_ref: (tm*h, W)  uint8 raw pixel rows for tm image planes (NCHW plane order)
    # wct_ref: (W, R)     f32 column interpolation weights (transposed), VMEM-resident
    # wr_ref : (R, h)     f32 row interpolation weights with 1/255 folded in
    # out_ref: (tm, R, R) f32 warped planes
    # tmp_ref: (tm*h, R)  f32 VMEM scratch for the separable intermediate
    x = img_ref[...].astype(jnp.float32)            # uint8 -> f32 on the VPU, in-kernel
    # Stage A (one 2D matmul over all tm planes): tmp[m*h + hh, s] = sum_w x * WcT
    tmp_ref[...] = jnp.dot(x, wct_ref[...], preferred_element_type=jnp.float32)
    # Stage B (per-plane small matmul): out[m, r, s] = sum_hh Wr[r, hh] * tmp[m, hh, s]
    wr = wr_ref[...]
    for m in range(tm):                             # static, fully unrolled
        t = tmp_ref[pl.ds(m * h, h), :]             # (h, R) static slice of scratch
        out_ref[m] = jnp.dot(wr, t, preferred_element_type=jnp.float32)


_FN_CACHE = {}


def _build_warp_fn(n, c, h, w, r, tm):
    m = n * c
    m_pad = ((m + tm - 1) // tm) * tm
    grid = (m_pad // tm,)

    kernel = functools.partial(_warp_kernel, tm=tm, h=h)
    flops = 2 * m_pad * h * r * (w + r)
    bytes_accessed = m_pad * h * w + 4 * (w * r + r * h) + 4 * m_pad * r * r

    call = pl.pallas_call(
        kernel,
        out_shape=jax.ShapeDtypeStruct((m_pad, r, r), jnp.float32),
        grid_spec=pltpu.PrefetchScalarGridSpec(
            num_scalar_prefetch=0,
            grid=grid,
            in_specs=[
                # tm planes of raw uint8 rows per grid step
                pl.BlockSpec((tm * h, w), lambda i: (i, 0)),
                # weights: same (tiny) block every step -> stay VMEM-resident
                pl.BlockSpec((w, r), lambda i: (0, 0)),
                pl.BlockSpec((r, h), lambda i: (0, 0)),
            ],
            out_specs=pl.BlockSpec((tm, r, r), lambda i: (i, 0, 0)),
            scratch_shapes=[pltpu.VMEM((tm * h, r), jnp.float32)],
        ),
        # "parallel" M-axis: megacore sharding on v7x's 2 TensorCores; the
        # double-buffered pipeline overlaps image DMA with compute on all chips.
        compiler_params=pltpu.CompilerParams(dimension_semantics=("parallel",)),
        cost_estimate=pl.CostEstimate(flops=flops, transcendentals=0,
                                      bytes_accessed=bytes_accessed),
    )

    def run(img2d, wct, wr):
        out = call(img2d, wct, wr)          # (m_pad, R, R)
        return out[:m].reshape(n, c, r, r)  # drop padding planes, NCHW

    return jax.jit(run), m_pad


def _get_warp_fn(n, c, h, w, r, tm):
    key = (n, c, h, w, r, tm)
    hit = _FN_CACHE.get(key)
    if hit is None:
        hit = _build_warp_fn(n, c, h, w, r, tm)
        _FN_CACHE[key] = hit
    return hit


# ----------------------------- wrappers -----------------------------

def emoca_preprocess_batch(images, scale=1.25, res_input=32,
                           detector_type="mediapipe", landmarks=None, tm=8):
    """Batched EMOCA preprocessing: images (N, H, W, C) uint8 -> (N, C, res, res) f32."""
    if landmarks is not None:
        # TODO(synk): landmark-driven (possibly rotated) similarity warp not implemented.
        raise NotImplementedError("landmark-driven warp not implemented")

    images = np.asarray(images)
    if images.dtype != np.uint8:
        # PIL images are uint8; tolerate float inputs by rounding.
        images = np.clip(np.rint(images), 0, 255).astype(np.uint8)
    N, H, W, C = images.shape

    wct, wr, meta = _get_warp_weights(H, W, res_input, scale, detector_type)

    # uint8 sublane tile is 32 rows: keep each grid block's row count aligned.
    while (tm * H) % 32:
        tm *= 2

    M = N * C
    m_pad = ((M + tm - 1) // tm) * tm
    planes = np.ascontiguousarray(np.transpose(images, (0, 3, 1, 2)).reshape(M, H, W))
    if m_pad != M:
        planes = np.concatenate(
            [planes, np.zeros((m_pad - M, H, W), dtype=np.uint8)], axis=0)
    img2d = jnp.asarray(planes.reshape(m_pad * H, W))   # uint8 upload (4x less H2D)

    run, m_pad_built = _get_warp_fn(N, C, H, W, res_input, tm)
    assert m_pad_built == m_pad
    out = run(img2d, wct, wr)                            # (N, C, res, res) f32

    warp_dict = {"size": meta["size"], "center": meta["center"], "crop": False}
    return out, warp_dict


def emoca_preprocess(image, scale=1.25, res_input=32, detector_type="mediapipe",
                     landmarks=None):
    """Reproduces EMOCA.warp_image + the image-tensor construction of EMOCA.forward.

    Args:
        image: (H, W, C) uint8 array (PIL-style HWC content, values in [0, 255]).
    Returns:
        data_image: (1, C, res_input, res_input) float32 (NCHW), the `data['image']`
                    that would be fed to model.encode.
        warp_dict:  {'size', 'center', 'crop'}
    """
    image = np.asarray(image)
    # Single frames are routed through the batched path (stable padded shape -> one
    # compiled kernel; batching over frames amortizes launch cost).
    return emoca_preprocess_batch(image[None], scale=scale, res_input=res_input,
                                  detector_type=detector_type, landmarks=landmarks)


# ----------------------------- reference (pure numpy) for sanity -----------------------------

def _reference(image_u8, scale=1.25, res_input=32, detector_type="mediapipe"):
    image = np.asarray(image_u8).astype(np.float32) / np.float32(255.0)
    H, W, C = image.shape
    _, _, meta = _get_warp_weights(H, W, res_input, scale, detector_type)
    Wr, Wc = meta["Wr"], meta["Wc"]
    out = np.einsum("rh,hwc,sw->crs", Wr, image, Wc)  # (C, res, res)
    return out[None].astype(np.float32)


# ----------------------------- main -----------------------------

if __name__ == "__main__":
    root = jax.random.PRNGKey(0)
    k1, k2 = jax.random.split(root)

    H, W, C = 16, 16, 3
    res_input = 32

    # synthetic "PIL image": uint8 values in [0, 255]
    image_np = np.asarray(
        jax.random.randint(k1, (H, W, C), 0, 256, dtype=jnp.int32)).astype(np.uint8)

    # single-image path (matches EMOCA.forward's data['image'] construction)
    data_image, warp_dict = emoca_preprocess(image_np, scale=1.25, res_input=res_input)
    data_image = jax.block_until_ready(data_image)
    assert data_image.shape == (1, C, res_input, res_input)
    assert warp_dict["crop"] is False
    ref = _reference(image_np, scale=1.25, res_input=res_input)
    np.testing.assert_allclose(np.asarray(data_image), ref, rtol=1e-5, atol=1e-5)

    # batched path (amortizes launch cost over frames; exercises the parallel M grid)
    N = 4
    batch_np = np.asarray(
        jax.random.randint(k2, (N, H, W, C), 0, 256, dtype=jnp.int32)).astype(np.uint8)
    batch_out, _ = emoca_preprocess_batch(batch_np, scale=1.25, res_input=res_input)
    batch_out = jax.block_until_ready(batch_out)
    assert batch_out.shape == (N, C, res_input, res_input)
    for n in range(N):
        ref_n = _reference(batch_np[n], scale=1.25, res_input=res_input)[0]
        np.testing.assert_allclose(np.asarray(batch_out[n]), ref_n,
                                   rtol=1e-5, atol=1e-5)

    print("KERNEL_OK")
</pallas_src>

<mosaic_0001>
module attributes {stable_mosaic.version = 11 : i64} {
  func.func @_warp_kernel(%arg0: i32, %arg1: memref<128x16xi8, #tpu.memory_space<vmem>>, %arg2: memref<16x32xf32, #tpu.memory_space<vmem>>, %arg3: memref<32x16xf32, #tpu.memory_space<vmem>>, %arg4: memref<8x32x32xf32, #tpu.memory_space<vmem>>, %arg5: memref<128x32xf32, #tpu.memory_space<vmem>>) attributes {dimension_semantics = [#tpu.dimension_semantics<parallel>], iteration_bounds = array<i64: 1>, scalar_prefetch = 0 : i64, scratch_operands = 1 : i64, tpu.core_type = #tpu.core_type<tc>, window_params = [{transform_indices = @transform_0, window_bounds = array<i64: 128, 16>}, {pipeline_mode = #tpu.pipeline_mode<synchronous>, transform_indices = @transform_1, window_bounds = array<i64: 16, 32>}, {pipeline_mode = #tpu.pipeline_mode<synchronous>, transform_indices = @transform_2, window_bounds = array<i64: 32, 16>}, {transform_indices = @transform_3, window_bounds = array<i64: 8, 32, 32>}]} {
    %c0 = arith.constant 0 : index
    %c0_0 = arith.constant 0 : index
    %0 = vector.load %arg1[%c0, %c0_0] : memref<128x16xi8, #tpu.memory_space<vmem>>, vector<128x16xi8>
    %1 = arith.uitofp %0 : vector<128x16xi8> to vector<128x16xf32>
    %c0_1 = arith.constant 0 : index
    %c0_2 = arith.constant 0 : index
    %2 = vector.load %arg2[%c0_1, %c0_2] : memref<16x32xf32, #tpu.memory_space<vmem>>, vector<16x32xf32>
    %cst = arith.constant dense<0.000000e+00> : vector<128x32xf32>
    %3 = tpu.matmul %1, %2, %cst {dimension_numbers = #tpu.dot_dimension_numbers<[1], [0], [0], [1], [0, 0, 1, 1], [], []>} : vector<128x16xf32>, vector<16x32xf32>, vector<128x32xf32> -> vector<128x32xf32>
    %c0_3 = arith.constant 0 : index
    %c0_4 = arith.constant 0 : index
    %4 = vector.load %arg5[%c0_3, %c0_4] : memref<128x32xf32, #tpu.memory_space<vmem>>, vector<128x32xf32>
    tpu.vector_store %arg5[%c0_3, %c0_4], %3 {strides = array<i32>} : memref<128x32xf32, #tpu.memory_space<vmem>>, vector<128x32xf32>,
    %c0_5 = arith.constant 0 : index
    %c0_6 = arith.constant 0 : index
    %5 = vector.load %arg3[%c0_5, %c0_6] : memref<32x16xf32, #tpu.memory_space<vmem>>, vector<32x16xf32>
    %c0_7 = arith.constant 0 : index
    %c0_8 = arith.constant 0 : index
    %6 = vector.load %arg5[%c0_7, %c0_8] : memref<128x32xf32, #tpu.memory_space<vmem>>, vector<16x32xf32>
    %cst_9 = arith.constant dense<0.000000e+00> : vector<32x32xf32>
    %7 = tpu.matmul %5, %6, %cst_9 {dimension_numbers = #tpu.dot_dimension_numbers<[1], [0], [0], [1], [0, 0, 1, 1], [], []>} : vector<32x16xf32>, vector<16x32xf32>, vector<32x32xf32> -> vector<32x32xf32>
    %c0_10 = arith.constant 0 : index
    %c0_11 = arith.constant 0 : index
    %c0_12 = arith.constant 0 : index
    %8 = vector.load %arg4[%c0_10, %c0_11, %c0_12] : memref<8x32x32xf32, #tpu.memory_space<vmem>>, vector<1x32x32xf32>
    %9 = vector.shape_cast %8 : vector<1x32x32xf32> to vector<32x32xf32>
    %10 = vector.shape_cast %7 : vector<32x32xf32> to vector<1x32x32xf32>
    tpu.vector_store %arg4[%c0_10, %c0_11, %c0_12], %10 {strides = array<i32>} : memref<8x32x32xf32, #tpu.memory_space<vmem>>, vector<1x32x32xf32>,
    %c16 = arith.constant 16 : index
    %c0_13 = arith.constant 0 : index
    %11 = vector.load %arg5[%c16, %c0_13] : memref<128x32xf32, #tpu.memory_space<vmem>>, vector<16x32xf32>
    %cst_14 = arith.constant dense<0.000000e+00> : vector<32x32xf32>
    %12 = tpu.matmul %5, %11, %cst_14 {dimension_numbers = #tpu.dot_dimension_numbers<[1], [0], [0], [1], [0, 0, 1, 1], [], []>} : vector<32x16xf32>, vector<16x32xf32>, vector<32x32xf32> -> vector<32x32xf32>
    %c1 = arith.constant 1 : index
    %c0_15 = arith.constant 0 : index
    %c0_16 = arith.constant 0 : index
    %13 = vector.load %arg4[%c1, %c0_15, %c0_16] : memref<8x32x32xf32, #tpu.memory_space<vmem>>, vector<1x32x32xf32>
    %14 = vector.shape_cast %13 : vector<1x32x32xf32> to vector<32x32xf32>
    %15 = vector.shape_cast %12 : vector<32x32xf32> to vector<1x32x32xf32>
    tpu.vector_store %arg4[%c1, %c0_15, %c0_16], %15 {strides = array<i32>} : memref<8x32x32xf32, #tpu.memory_space<vmem>>, vector<1x32x32xf32>,
    %c32 = arith.constant 32 : index
    %c0_17 = arith.constant 0 : index
    %16 = vector.load %arg5[%c32, %c0_17] : memref<128x32xf32, #tpu.memory_space<vmem>>, vector<16x32xf32>
    %cst_18 = arith.constant dense<0.000000e+00> : vector<32x32xf32>
    %17 = tpu.matmul %5, %16, %cst_18 {dimension_numbers = #tpu.dot_dimension_numbers<[1], [0], [0], [1], [0, 0, 1, 1], [], []>} : vector<32x16xf32>, vector<16x32xf32>, vector<32x32xf32> -> vector<32x32xf32>
    %c2 = arith.constant 2 : index
    %c0_19 = arith.constant 0 : index
    %c0_20 = arith.constant 0 : index
    %18 = vector.load %arg4[%c2, %c0_19, %c0_20] : memref<8x32x32xf32, #tpu.memory_space<vmem>>, vector<1x32x32xf32>
    %19 = vector.shape_cast %18 : vector<1x32x32xf32> to vector<32x32xf32>
    %20 = vector.shape_cast %17 : vector<32x32xf32> to vector<1x32x32xf32>
    tpu.vector_store %arg4[%c2, %c0_19, %c0_20], %20 {strides = array<i32>} : memref<8x32x32xf32, #tpu.memory_space<vmem>>, vector<1x32x32xf32>,
    %c48 = arith.constant 48 : index
    %c0_21 = arith.constant 0 : index
    %21 = vector.load %arg5[%c48, %c0_21] : memref<128x32xf32, #tpu.memory_space<vmem>>, vector<16x32xf32>
    %cst_22 = arith.constant dense<0.000000e+00> : vector<32x32xf32>
    %22 = tpu.matmul %5, %21, %cst_22 {dimension_numbers = #tpu.dot_dimension_numbers<[1], [0], [0], [1], [0, 0, 1, 1], [], []>} : vector<32x16xf32>, vector<16x32xf32>, vector<32x32xf32> -> vector<32x32xf32>
    %c3 = arith.constant 3 : index
    %c0_23 = arith.constant 0 : index
    %c0_24 = arith.constant 0 : index
    %23 = vector.load %arg4[%c3, %c0_23, %c0_24] : memref<8x32x32xf32, #tpu.memory_space<vmem>>, vector<1x32x32xf32>
    %24 = vector.shape_cast %23 : vector<1x32x32xf32> to vector<32x32xf32>
    %25 = vector.shape_cast %22 : vector<32x32xf32> to vector<1x32x32xf32>
    tpu.vector_store %arg4[%c3, %c0_23, %c0_24], %25 {strides = array<i32>} : memref<8x32x32xf32, #tpu.memory_space<vmem>>, vector<1x32x32xf32>,
    %c64 = arith.constant 64 : index
    %c0_25 = arith.constant 0 : index
    %26 = vector.load %arg5[%c64, %c0_25] : memref<128x32xf32, #tpu.memory_space<vmem>>, vector<16x32xf32>
    %cst_26 = arith.constant dense<0.000000e+00> : vector<32x32xf32>
    %27 = tpu.matmul %5, %26, %cst_26 {dimension_numbers = #tpu.dot_dimension_numbers<[1], [0], [0], [1], [0, 0, 1, 1], [], []>} : vector<32x16xf32>, vector<16x32xf32>, vector<32x32xf32> -> vector<32x32xf32>
    %c4 = arith.constant 4 : index
    %c0_27 = arith.constant 0 : index
    %c0_28 = arith.constant 0 : index
    %28 = vector.load %arg4[%c4, %c0_27, %c0_28] : memref<8x32x32xf32, #tpu.memory_space<vmem>>, vector<1x32x32xf32>
    %29 = vector.shape_cast %28 : vector<1x32x32xf32> to vector<32x32xf32>
    %30 = vector.shape_cast %27 : vector<32x32xf32> to vector<1x32x32xf32>
    tpu.vector_store %arg4[%c4, %c0_27, %c0_28], %30 {strides = array<i32>} : memref<8x32x32xf32, #tpu.memory_space<vmem>>, vector<1x32x32xf32>,
    %c80 = arith.constant 80 : index
    %c0_29 = arith.constant 0 : index
    %31 = vector.load %arg5[%c80, %c0_29] : memref<128x32xf32, #tpu.memory_space<vmem>>, vector<16x32xf32>
    %cst_30 = arith.constant dense<0.000000e+00> : vector<32x32xf32>
    %32 = tpu.matmul %5, %31, %cst_30 {dimension_numbers = #tpu.dot_dimension_numbers<[1], [0], [0], [1], [0, 0, 1, 1], [], []>} : vector<32x16xf32>, vector<16x32xf32>, vector<32x32xf32> -> vector<32x32xf32>
    %c5 = arith.constant 5 : index
    %c0_31 = arith.constant 0 : index
    %c0_32 = arith.constant 0 : index
    %33 = vector.load %arg4[%c5, %c0_31, %c0_32] : memref<8x32x32xf32, #tpu.memory_space<vmem>>, vector<1x32x32xf32>
    %34 = vector.shape_cast %33 : vector<1x32x32xf32> to vector<32x32xf32>
    %35 = vector.shape_cast %32 : vector<32x32xf32> to vector<1x32x32xf32>
    tpu.vector_store %arg4[%c5, %c0_31, %c0_32], %35 {strides = array<i32>} : memref<8x32x32xf32, #tpu.memory_space<vmem>>, vector<1x32x32xf32>,
    %c96 = arith.constant 96 : index
    %c0_33 = arith.constant 0 : index
    %36 = vector.load %arg5[%c96, %c0_33] : memref<128x32xf32, #tpu.memory_space<vmem>>, vector<16x32xf32>
    %cst_34 = arith.constant dense<0.000000e+00> : vector<32x32xf32>
    %37 = tpu.matmul %5, %36, %cst_34 {dimension_numbers = #tpu.dot_dimension_numbers<[1], [0], [0], [1], [0, 0, 1, 1], [], []>} : vector<32x16xf32>, vector<16x32xf32>, vector<32x32xf32> -> vector<32x32xf32>
    %c6 = arith.constant 6 : index
    %c0_35 = arith.constant 0 : index
    %c0_36 = arith.constant 0 : index
    %38 = vector.load %arg4[%c6, %c0_35, %c0_36] : memref<8x32x32xf32, #tpu.memory_space<vmem>>, vector<1x32x32xf32>
    %39 = vector.shape_cast %38 : vector<1x32x32xf32> to vector<32x32xf32>
    %40 = vector.shape_cast %37 : vector<32x32xf32> to vector<1x32x32xf32>
    tpu.vector_store %arg4[%c6, %c0_35, %c0_36], %40 {strides = array<i32>} : memref<8x32x32xf32, #tpu.memory_space<vmem>>, vector<1x32x32xf32>,
    %c112 = arith.constant 112 : index
    %c0_37 = arith.constant 0 : index
    %41 = vector.load %arg5[%c112, %c0_37] : memref<128x32xf32, #tpu.memory_space<vmem>>, vector<16x32xf32>
    %cst_38 = arith.constant dense<0.000000e+00> : vector<32x32xf32>
    %42 = tpu.matmul %5, %41, %cst_38 {dimension_numbers = #tpu.dot_dimension_numbers<[1], [0], [0], [1], [0, 0, 1, 1], [], []>} : vector<32x16xf32>, vector<16x32xf32>, vector<32x32xf32> -> vector<32x32xf32>
    %c7 = arith.constant 7 : index
    %c0_39 = arith.constant 0 : index
    %c0_40 = arith.constant 0 : index
    %43 = vector.load %arg4[%c7, %c0_39, %c0_40] : memref<8x32x32xf32, #tpu.memory_space<vmem>>, vector<1x32x32xf32>
    %44 = vector.shape_cast %43 : vector<1x32x32xf32> to vector<32x32xf32>
    %45 = vector.shape_cast %42 : vector<32x32xf32> to vector<1x32x32xf32>
    tpu.vector_store %arg4[%c7, %c0_39, %c0_40], %45 {strides = array<i32>} : memref<8x32x32xf32, #tpu.memory_space<vmem>>, vector<1x32x32xf32>,
    return
  }
  func.func @transform_0(%arg0: i32) -> (i32, i32) {
    %c0_i32 = arith.constant 0 : i32
    %c0_i32_0 = arith.constant 0 : i32
    return %arg0, %c0_i32 : i32, i32
  }
  func.func @transform_1(%arg0: i32) -> (i32, i32) {
    %c0_i32 = arith.constant 0 : i32
    %c0_i32_0 = arith.constant 0 : i32
    %c0_i32_1 = arith.constant 0 : i32
    return %c0_i32, %c0_i32_0 : i32, i32
  }
  func.func @transform_2(%arg0: i32) -> (i32, i32) {
    %c0_i32 = arith.constant 0 : i32
    %c0_i32_0 = arith.constant 0 : i32
    %c0_i32_1 = arith.constant 0 : i32
    return %c0_i32, %c0_i32_0 : i32, i32
  }
  func.func @transform_3(%arg0: i32) -> (i32, i32, i32) {
    %c0_i32 = arith.constant 0 : i32
    %c0_i32_0 = arith.constant 0 : i32
    %c0_i32_1 = arith.constant 0 : i32
    return %arg0, %c0_i32, %c0_i32_0 : i32, i32, i32
  }
}

</mosaic_0001>

<bundles_post_ra>
// kernel: run.1
= control target key start
LH: loop header
LB: loop body
LE: loop exit
PB: predicated region body
PF: predicated region fallthrough
CT: control target
= control target key end

     0   :  { %vm68_vm0 = vcmask 130048   ;;  %vm182_vm1 = vcmask 261120   ;;  %s866_s1 = inlined_call_operand.vmem [shape: f32[16,32], index: 1, kind: input, shape index: {}]   ;;  %s867_s0 = inlined_call_operand.vmem [shape: u8[128,16], index: 0, kind: input, shape index: {}]   ;;  %s868_s2 = inlined_call_operand.vmem [shape: f32[32,16], index: 2, kind: input, shape index: {}]   ;;  %s869_s3 = inlined_call_operand.vmem [shape: f32[8,32,32], index: 3, kind: output, shape index: {}]  }
   0x1   :  { %v67_v0 = vld [vmem:[%s866_s1 + $0x8] sm:$0xff]  ;;  %v66_v1 = vld [vmem:[%s866_s1] sm:$0xff]  ;;  %v17_v18 = vld [vmem:[%s867_s0 + $0x18] sm:$0xff] }
   0x2   :  { %v14_v2 = vld [vmem:[%s867_s0] sm:$0xff]  ;;  %131 = vmatpush.msra.mxu0 %v67_v0  ;;  %582 = vmatpush.msra.mxu3 %v67_v0  ;;  %v15_v14 = vld [vmem:[%s867_s0 + $0x8] sm:$0xff]  ;;  %v30_v19 = vunpack.c.0.s8 %v17_v18  ;;  %v31_v25 = vunpack.c.1.s8 %v17_v18  ;;  %v32_v31 = vunpack.c.2.s8 %v17_v18  ;;  %v33_v37 = vunpack.c.3.s8 %v17_v18  ;;  %v16_v38 = vld [vmem:[%s867_s0 + $0x10] sm:$0xff] }
   0x3   :  { %v18_v3 = vunpack.c.0.s8 %v14_v2  ;;  %v19_v5 = vunpack.c.1.s8 %v14_v2  ;;  %v20_v9 = vunpack.c.2.s8 %v14_v2  ;;  %v21_v12 = vunpack.c.3.s8 %v14_v2  ;;  %v644_v59 = vld [vmem:[%s868_s2] sm:$0xff]  ;;  %v652_v61 = vld [vmem:[%s868_s2 + $0x8] sm:$0xff] }
   0x4   :  { %132 = vmatpush.msra.mxu0 %v66_v1  ;;  %583 = vmatpush.msra.mxu3 %v66_v1  ;;  %v22_v16 = vunpack.c.0.s8 %v15_v14  ;;  %v23_v21 = vunpack.c.1.s8 %v15_v14  ;;  %v46_v22 = vand.u32 255, %v30_v19  ;;  %v24_v27 = vunpack.c.2.s8 %v15_v14  ;;  %v660_v1 = vld [vmem:[%s868_s2 + $0x10] sm:$0xff] }
   0x5   :  { %v34_v4 = vand.u32 255, %v18_v3  ;;  %v35_v7 = vand.u32 255, %v19_v5  ;;  %v36_v10 = vand.u32 255, %v20_v9  ;;  %v37_v13 = vand.u32 255, %v21_v12 }
   0x6   :  { %v38_v17 = vand.u32 255, %v22_v16  ;;  %v62_v23 = vcvt.s32.f32 %v46_v22  ;;  %v39_v24 = vand.u32 255, %v23_v21  ;;  %v47_v28 = vand.u32 255, %v31_v25 }
   0x7   :  { %v50_v6 = vcvt.s32.f32 %v34_v4  ;;  %v51_v8 = vcvt.s32.f32 %v35_v7  ;;  %v52_v11 = vcvt.s32.f32 %v36_v10  ;;  %v53_v15 = vcvt.s32.f32 %v37_v13  ;;  %v671_v4 = vld [vmem:[%s868_s2 + $0x18] sm:$0xff] }
   0x8   :  { %v54_v20 = vcvt.s32.f32 %v38_v17  ;;  %518 = vmatmul.msk.f32.vlgmr.msra.gmra.mxu3 %vm68_vm0, %v62_v23  ;;  %v55_v26 = vcvt.s32.f32 %v39_v24  ;;  %v63_v29 = vcvt.s32.f32 %v47_v28  ;;  %v40_v30 = vand.u32 255, %v24_v27 }
   0x9   :  { %506 = vmatmul.msk.f32.vlgmr.msra.gmra.mxu0 %vm68_vm0, %v50_v6  ;;  %v48_v32 = vand.u32 255, %v32_v31  ;;  %v25_v34 = vunpack.c.3.s8 %v15_v14  ;;  %v49_v39 = vand.u32 255, %v33_v37  ;;  %v26_v41 = vunpack.c.0.s8 %v16_v38 }
   0xa   :  { %v56_v33 = vcvt.s32.f32 %v40_v30  ;;  %v27_v45 = vunpack.c.1.s8 %v16_v38  ;;  %v28_v48 = vunpack.c.2.s8 %v16_v38  ;;  %v29_v51 = vunpack.c.3.s8 %v16_v38 }
   0xb   :  { %v64_v35 = vcvt.s32.f32 %v48_v32  ;;  %v41_v36 = vand.u32 255, %v25_v34  ;;  %v65_v42 = vcvt.s32.f32 %v49_v39  ;;  %v42_v43 = vand.u32 255, %v26_v41 }
   0xc   :  { %v43_v46 = vand.u32 255, %v27_v45  ;;  %v44_v49 = vand.u32 255, %v28_v48  ;;  %v45_v52 = vand.u32 255, %v29_v51 }
   0xd   :  { %v57_v40 = vcvt.s32.f32 %v41_v36  ;;  %v58_v44 = vcvt.s32.f32 %v42_v43 }
   0xe   :  { %v59_v47 = vcvt.s32.f32 %v43_v46  ;;  %v60_v50 = vcvt.s32.f32 %v44_v49  ;;  %v61_v53 = vcvt.s32.f32 %v45_v52 }
  0x10   :  { %519 = vmatmul.msk.f32.gmra.mxu3 %vm68_vm0, %v63_v29 }
  0x11   :  { %507 = vmatmul.msk.f32.gmra.mxu0 %vm68_vm0, %v51_v8 }
  0x18   :  { %520 = vmatmul.msk.f32.gmra.mxu3 %vm68_vm0, %v64_v35 }
  0x19   :  { %508 = vmatmul.msk.f32.gmra.mxu0 %vm68_vm0, %v52_v11 }
  0x20   :  { %521 = vmatmul.msk.f32.gmra.mxu3 %vm68_vm0, %v65_v42 }
  0x21   :  { %509 = vmatmul.msk.f32.gmra.mxu0 %vm68_vm0, %v53_v15 }
  0x29   :  { %510 = vmatmul.msk.f32.gmra.mxu0 %vm68_vm0, %v54_v20 }
  0x31   :  { %511 = vmatmul.msk.f32.gmra.mxu0 %vm68_vm0, %v55_v26 }
  0x39   :  { %512 = vmatmul.msk.f32.gmra.mxu0 %vm68_vm0, %v56_v33 }
  0x41   :  { %513 = vmatmul.msk.f32.gmra.mxu0 %vm68_vm0, %v57_v40 }
  0x49   :  { %514 = vmatmul.msk.f32.gmra.mxu0 %vm68_vm0, %v58_v44 }
  0x51   :  { %515 = vmatmul.msk.f32.gmra.mxu0 %vm68_vm0, %v59_v47 }
  0x59   :  { %516 = vmatmul.msk.f32.gmra.mxu0 %vm68_vm0, %v60_v50 }
  0x61   :  { %517 = vmatmul.msk.f32.gmra.mxu0 %vm68_vm0, %v61_v53 }
  0x86   :  { %v134_v54 = vpop.f32.mrf.mxu0 }
  0x87   :  { %183 = vst.msk [vmem:[#allocation2] sm:$0xff] %vm182_vm1, %v134_v54 }
  0x8b   :  { %v170_v2 = vpop.f32.mrf.mxu3 }
  0x8c   :  { %195 = vst.msk [vmem:[#allocation2 + $0x60] sm:$0xff] %vm182_vm1, %v170_v2 }
  0x8e   :  { %v137_v55 = vpop.f32.mrf.mxu0  ;;  %v203_v58 = vld [vmem:[#allocation2] sm:$0xff] }
  0x8f   :  { %184 = vst.msk [vmem:[#allocation2 + $0x8] sm:$0xff] %vm182_vm1, %v137_v55 }
  0x93   :  { %v173_v5 = vpop.f32.mrf.mxu3  ;;  %v430_v16 = vld [vmem:[#allocation2 + $0x60] sm:$0xff] }
  0x94   :  { %196 = vst.msk [vmem:[#allocation2 + $0x68] sm:$0xff] %vm182_vm1, %v173_v5 }
  0x96   :  { %v140_v56 = vpop.f32.mrf.mxu0  ;;  %v204_v57 = vld [vmem:[#allocation2 + $0x8] sm:$0xff] }
  0x97   :  { %185 = vst.msk [vmem:[#allocation2 + $0x10] sm:$0xff] %vm182_vm1, %v140_v56  ;;  %231 = vmatpush.msra.mxu1 %v204_v57 }
  0x99   :  { %232 = vmatpush.msra.mxu1 %v203_v58 }
  0x9a   :  { %522 = vmatmul.msk.f32.vlgmr.msra.gmra.mxu1 %vm68_vm0, %v644_v59 }
  0x9b   :  { %v176_v9 = vpop.f32.mrf.mxu3  ;;  %v431_v14 = vld [vmem:[#allocation2 + $0x68] sm:$0xff] }
  0x9c   :  { %197 = vst.msk [vmem:[#allocation2 + $0x70] sm:$0xff] %vm182_vm1, %v176_v9 }
  0x9e   :  { %v143_v60 = vpop.f32.mrf.mxu0  ;;  %v250_v0 = vld [vmem:[#allocation2 + $0x10] sm:$0xff] }
  0x9f   :  { %186 = vst.msk [vmem:[#allocation2 + $0x18] sm:$0xff] %vm182_vm1, %v143_v60 }
  0xa2   :  { %523 = vmatmul.msk.f32.gmra.mxu1 %vm68_vm0, %v652_v61 }
  0xa3   :  { %v179_v11 = vpop.f32.mrf.mxu3  ;;  %v466_v22 = vld [vmem:[#allocation2 + $0x70] sm:$0xff] }
  0xa4   :  { %198 = vst.msk [vmem:[#allocation2 + $0x78] sm:$0xff] %vm182_vm1, %v179_v11 }
  0xa6   :  { %v146_v62 = vpop.f32.mrf.mxu0  ;;  %v251_v63 = vld [vmem:[#allocation2 + $0x18] sm:$0xff] }
  0xa7   :  { %187 = vst.msk [vmem:[#allocation2 + $0x20] sm:$0xff] %vm182_vm1, %v146_v62  ;;  %266 = vmatpush.msra.mxu2 %v251_v63 }
  0xa9   :  { %267 = vmatpush.msra.mxu2 %v250_v0 }
  0xaa   :  { %526 = vmatmul.msk.f32.vlgmr.msra.gmra.mxu2 %vm68_vm0, %v644_v59  ;;  %524 = vmatmul.msk.f32.gmra.mxu1 %vm68_vm0, %v660_v1 }
  0xab   :  { %v467_v20 = vld [vmem:[#allocation2 + $0x78] sm:$0xff] }
  0xae   :  { %v149_v3 = vpop.f32.mrf.mxu0  ;;  %v286_v8 = vld [vmem:[#allocation2 + $0x20] sm:$0xff] }
  0xaf   :  { %188 = vst.msk [vmem:[#allocation2 + $0x28] sm:$0xff] %vm182_vm1, %v149_v3 }
  0xb2   :  { %527 = vmatmul.msk.f32.gmra.mxu2 %vm68_vm0, %v652_v61  ;;  %525 = vmatmul.msk.f32.gmra.mxu1 %vm68_vm0, %v671_v4 }
  0xb6   :  { %v152_v6 = vpop.f32.mrf.mxu0  ;;  %v287_v7 = vld [vmem:[#allocation2 + $0x28] sm:$0xff] }
  0xb7   :  { %189 = vst.msk [vmem:[#allocation2 + $0x30] sm:$0xff] %vm182_vm1, %v152_v6  ;;  %302 = vmatpush.msrb.mxu3 %v287_v7 }
  0xb9   :  { %303 = vmatpush.msrb.mxu3 %v286_v8 }
  0xba   :  { %528 = vmatmul.msk.f32.gmra.mxu2 %vm68_vm0, %v660_v1  ;;  %534 = vmatmul.msk.f32.vlgmr.msrb.gmra.mxu3 %vm68_vm0, %v644_v59 }
  0xbe   :  { %v155_v10 = vpop.f32.mrf.mxu0  ;;  %v322_v15 = vld [vmem:[#allocation2 + $0x30] sm:$0xff] }
  0xbf   :  { %190 = vst.msk [vmem:[#allocation2 + $0x38] sm:$0xff] %vm182_vm1, %v155_v10 }
  0xc2   :  { %529 = vmatmul.msk.f32.gmra.mxu2 %vm68_vm0, %v671_v4  ;;  %535 = vmatmul.msk.f32.gmra.mxu3 %vm68_vm0, %v652_v61 }
  0xc6   :  { %v158_v12 = vpop.f32.mrf.mxu0  ;;  %v323_v13 = vld [vmem:[#allocation2 + $0x38] sm:$0xff] }
  0xc7   :  { %191 = vst.msk [vmem:[#allocation2 + $0x40] sm:$0xff] %vm182_vm1, %v158_v12  ;;  %338 = vmatpush.msrb.mxu1 %v323_v13 }
  0xc9   :  { %339 = vmatpush.msrb.mxu1 %v322_v15 }
  0xca   :  { %536 = vmatmul.msk.f32.gmra.mxu3 %vm68_vm0, %v660_v1  ;;  %542 = vmatmul.msk.f32.vlgmr.msrb.gmra.mxu1 %vm68_vm0, %v644_v59 }
  0xcb   :  { %446 = vmatpush.msra.mxu1 %v431_v14 }
  0xcd   :  { %447 = vmatpush.msra.mxu1 %v430_v16 }
  0xce   :  { %v161_v17 = vpop.f32.mrf.mxu0  ;;  %v358_v21 = vld [vmem:[#allocation2 + $0x40] sm:$0xff] }
  0xcf   :  { %192 = vst.msk [vmem:[#allocation2 + $0x48] sm:$0xff] %vm182_vm1, %v161_v17 }
  0xd2   :  { %537 = vmatmul.msk.f32.gmra.mxu3 %vm68_vm0, %v671_v4  ;;  %543 = vmatmul.msk.f32.gmra.mxu1 %vm68_vm0, %v652_v61 }
  0xd6   :  { %v359_v18 = vld [vmem:[#allocation2 + $0x48] sm:$0xff]  ;;  %v164_v19 = vpop.f32.mrf.mxu0 }
  0xd7   :  { %374 = vmatpush.msrb.mxu2 %v359_v18  ;;  %193 = vst.msk [vmem:[#allocation2 + $0x50] sm:$0xff] %vm182_vm1, %v164_v19 }
  0xd9   :  { %375 = vmatpush.msrb.mxu2 %v358_v21 }
  0xda   :  { %550 = vmatmul.msk.f32.vlgmr.msrb.gmra.mxu2 %vm68_vm0, %v644_v59  ;;  %544 = vmatmul.msk.f32.gmra.mxu1 %vm68_vm0, %v660_v1 }
  0xdb   :  { %482 = vmatpush.msra.mxu2 %v467_v20 }
  0xdd   :  { %483 = vmatpush.msra.mxu2 %v466_v22 }
  0xde   :  { %v167_v23 = vpop.f32.mrf.mxu0  ;;  %v394_v25 = vld [vmem:[#allocation2 + $0x50] sm:$0xff] }
  0xdf   :  { %194 = vst.msk [vmem:[#allocation2 + $0x58] sm:$0xff] %vm182_vm1, %v167_v23 }
  0xe2   :  { %551 = vmatmul.msk.f32.gmra.mxu2 %vm68_vm0, %v652_v61  ;;  %545 = vmatmul.msk.f32.gmra.mxu1 %vm68_vm0, %v671_v4 }
  0xe6   :  { %v395_v24 = vld [vmem:[#allocation2 + $0x58] sm:$0xff] }
  0xe7   :  { %410 = vmatpush.msra.mxu3 %v395_v24 }
  0xe9   :  { %411 = vmatpush.msra.mxu3 %v394_v25 }
  0xea   :  { %558 = vmatmul.msk.f32.vlgmr.msra.gmra.mxu3 %vm68_vm0, %v644_v59  ;;  %552 = vmatmul.msk.f32.gmra.mxu2 %vm68_vm0, %v660_v1 }
  0xeb   :  { %566 = vmatmul.msk.f32.vlgmr.msra.gmra.mxu1 %vm68_vm0, %v644_v59 }
  0xf2   :  { %559 = vmatmul.msk.f32.gmra.mxu3 %vm68_vm0, %v652_v61  ;;  %553 = vmatmul.msk.f32.gmra.mxu2 %vm68_vm0, %v671_v4 }
  0xf3   :  { %567 = vmatmul.msk.f32.gmra.mxu1 %vm68_vm0, %v652_v61 }
  0xfa   :  { %560 = vmatmul.msk.f32.gmra.mxu3 %vm68_vm0, %v660_v1  ;;  %574 = vmatmul.msk.f32.vlgmr.msra.gmra.mxu2 %vm68_vm0, %v644_v59 }
  0xfb   :  { %568 = vmatmul.msk.f32.gmra.mxu1 %vm68_vm0, %v660_v1 }
 0x102   :  { %561 = vmatmul.msk.f32.gmra.mxu3 %vm68_vm0, %v671_v4  ;;  %575 = vmatmul.msk.f32.gmra.mxu2 %vm68_vm0, %v652_v61 }
 0x103   :  { %569 = vmatmul.msk.f32.gmra.mxu1 %vm68_vm0, %v671_v4 }
 0x10a   :  { %576 = vmatmul.msk.f32.gmra.mxu2 %vm68_vm0, %v660_v1 }
 0x112   :  { %577 = vmatmul.msk.f32.gmra.mxu2 %vm68_vm0, %v671_v4 }
 0x117   :  { %v234_v26 = vpop.f32.mrf.mxu1 }
 0x118   :  { %246 = vst.msk [vmem:[%s869_s3] sm:$0xff] %vm182_vm1, %v234_v26 }
 0x11f   :  { %v237_v27 = vpop.f32.mrf.mxu1 }
 0x120   :  { %247 = vst.msk [vmem:[%s869_s3 + $0x8] sm:$0xff] %vm182_vm1, %v237_v27 }
 0x127   :  { %v240_v28 = vpop.f32.mrf.mxu1 }
 0x128   :  { %248 = vst.msk [vmem:[%s869_s3 + $0x10] sm:$0xff] %vm182_vm1, %v240_v28 }
 0x12d   :  { %v269_v29 = vpop.f32.mrf.mxu2 }
 0x12e   :  { %530 = vst.msk [vmem:[%s869_s3 + $0x20] sm:$0xff] %vm182_vm1, %v269_v29 }
 0x12f   :  { %v243_v30 = vpop.f32.mrf.mxu1 }
 0x130   :  { %249 = vst.msk [vmem:[%s869_s3 + $0x18] sm:$0xff] %vm182_vm1, %v243_v30 }
 0x135   :  { %v272_v31 = vpop.f32.mrf.mxu2 }
 0x136   :  { %531 = vst.msk [vmem:[%s869_s3 + $0x28] sm:$0xff] %vm182_vm1, %v272_v31 }
 0x13d   :  { %v275_v32 = vpop.f32.mrf.mxu2  ;;  %v305_v33 = vpop.f32.mrf.mxu3 }
 0x13e   :  { %532 = vst.msk [vmem:[%s869_s3 + $0x30] sm:$0xff] %vm182_vm1, %v275_v32 }
 0x13f   :  { %538 = vst.msk [vmem:[%s869_s3 + $0x40] sm:$0xff] %vm182_vm1, %v305_v33 }
 0x145   :  { %v278_v34 = vpop.f32.mrf.mxu2  ;;  %v308_v35 = vpop.f32.mrf.mxu3 }
 0x146   :  { %533 = vst.msk [vmem:[%s869_s3 + $0x38] sm:$0xff] %vm182_vm1, %v278_v34 }
 0x147   :  { %539 = vst.msk [vmem:[%s869_s3 + $0x48] sm:$0xff] %vm182_vm1, %v308_v35  ;;  %v341_v36 = vpop.f32.mrf.mxu1 }
 0x148   :  { %546 = vst.msk [vmem:[%s869_s3 + $0x60] sm:$0xff] %vm182_vm1, %v341_v36 }
 0x14d   :  { %v311_v37 = vpop.f32.mrf.mxu3 }
 0x14e   :  { %540 = vst.msk [vmem:[%s869_s3 + $0x50] sm:$0xff] %vm182_vm1, %v311_v37 }
 0x14f   :  { %v344_v38 = vpop.f32.mrf.mxu1 }
 0x150   :  { %547 = vst.msk [vmem:[%s869_s3 + $0x68] sm:$0xff] %vm182_vm1, %v344_v38 }
 0x155   :  { %v314_v39 = vpop.f32.mrf.mxu3 }
 0x156   :  { %541 = vst.msk [vmem:[%s869_s3 + $0x58] sm:$0xff] %vm182_vm1, %v314_v39 }
 0x157   :  { %v347_v40 = vpop.f32.mrf.mxu1 }
 0x158   :  { %548 = vst.msk [vmem:[%s869_s3 + $0x70] sm:$0xff] %vm182_vm1, %v347_v40 }
 0x15d   :  { %v377_v41 = vpop.f32.mrf.mxu2 }
 0x15e   :  { %554 = vst.msk [vmem:[%s869_s3 + $0x80] sm:$0xff] %vm182_vm1, %v377_v41 }
 0x15f   :  { %v350_v42 = vpop.f32.mrf.mxu1 }
 0x160   :  { %549 = vst.msk [vmem:[%s869_s3 + $0x78] sm:$0xff] %vm182_vm1, %v350_v42 }
 0x165   :  { %v380_v43 = vpop.f32.mrf.mxu2 }
 0x166   :  { %555 = vst.msk [vmem:[%s869_s3 + $0x88] sm:$0xff] %vm182_vm1, %v380_v43 }
 0x168   :  { %v449_v44 = vpop.f32.mrf.mxu1 }
 0x169   :  { %570 = vst.msk [vmem:[%s869_s3 + $0xc0] sm:$0xff] %vm182_vm1, %v449_v44 }
 0x16d   :  { %v413_v45 = vpop.f32.mrf.mxu3  ;;  %v383_v46 = vpop.f32.mrf.mxu2 }
 0x16e   :  { %562 = vst.msk [vmem:[%s869_s3 + $0xa0] sm:$0xff] %vm182_vm1, %v413_v45 }
 0x16f   :  { %556 = vst.msk [vmem:[%s869_s3 + $0x90] sm:$0xff] %vm182_vm1, %v383_v46 }
 0x170   :  { %v452_v47 = vpop.f32.mrf.mxu1 }
 0x171   :  { %571 = vst.msk [vmem:[%s869_s3 + $0xc8] sm:$0xff] %vm182_vm1, %v452_v47 }
 0x175   :  { %v416_v48 = vpop.f32.mrf.mxu3  ;;  %v386_v49 = vpop.f32.mrf.mxu2 }
 0x176   :  { %563 = vst.msk [vmem:[%s869_s3 + $0xa8] sm:$0xff] %vm182_vm1, %v416_v48 }
 0x177   :  { %557 = vst.msk [vmem:[%s869_s3 + $0x98] sm:$0xff] %vm182_vm1, %v386_v49 }
 0x178   :  { %v455_v50 = vpop.f32.mrf.mxu1 }
 0x179   :  { %572 = vst.msk [vmem:[%s869_s3 + $0xd0] sm:$0xff] %vm182_vm1, %v455_v50 }
 0x17d   :  { %v419_v51 = vpop.f32.mrf.mxu3  ;;  %v485_v52 = vpop.f32.mrf.mxu2 }
 0x17e   :  { %564 = vst.msk [vmem:[%s869_s3 + $0xb0] sm:$0xff] %vm182_vm1, %v419_v51 }
 0x17f   :  { %578 = vst.msk [vmem:[%s869_s3 + $0xe0] sm:$0xff] %vm182_vm1, %v485_v52 }
 0x180   :  { %v458_v53 = vpop.f32.mrf.mxu1 }
 0x181   :  { %573 = vst.msk [vmem:[%s869_s3 + $0xd8] sm:$0xff] %vm182_vm1, %v458_v53 }
 0x185   :  { %v422_v54 = vpop.f32.mrf.mxu3  ;;  %v488_v55 = vpop.f32.mrf.mxu2 }
 0x186   :  { %565 = vst.msk [vmem:[%s869_s3 + $0xb8] sm:$0xff] %vm182_vm1, %v422_v54 }
 0x187   :  { %579 = vst.msk [vmem:[%s869_s3 + $0xe8] sm:$0xff] %vm182_vm1, %v488_v55 }
 0x18d   :  { %v491_v56 = vpop.f32.mrf.mxu2 }
 0x18e   :  { %580 = vst.msk [vmem:[%s869_s3 + $0xf0] sm:$0xff] %vm182_vm1, %v491_v56 }
 0x195   :  { %v494_v57 = vpop.f32.mrf.mxu2 }
 0x196   :  { %581 = vst.msk [vmem:[%s869_s3 + $0xf8] sm:$0xff] %vm182_vm1, %v494_v57 }

</bundles_post_ra>
